<compile_context>
chip_gen: v7x
topology: tpu7x:2x2x1
jax: 0.10.0
libtpu: 0.0.40
codegen_flags: <defaults>
</compile_context>

<pallas_src>
import jax
import jax.numpy as jnp
from jax.experimental import pallas as pl
from jax.experimental.pallas import tpu as pltpu


def _round_up(x, m):
    return (x + m - 1) // m * m


def _matmul_bias_relu_kernel(p_ref, w_ref, b_ref, o_ref):
    # Hot path: conv-as-matmul on the MXU (bf16 in, f32 acc) + bias + ReLU.
    acc = jnp.dot(p_ref[...], w_ref[...], preferred_element_type=jnp.float32)
    o_ref[...] = jnp.maximum(acc + b_ref[...], 0.0).astype(o_ref.dtype)


def _extract_patches_s2_k3_p1(x_nhwc):
    """im2col for a 3x3 conv, stride 2, padding 1 (glue, plain JAX)."""
    B, H, W, C = x_nhwc.shape
    Ho = (H + 2 - 3) // 2 + 1
    Wo = (W + 2 - 3) // 2 + 1
    xp = jnp.pad(x_nhwc, ((0, 0), (1, 1), (1, 1), (0, 0)))
    cols = []
    for kh in range(3):
        for kw in range(3):
            cols.append(xp[:, kh:kh + 2 * Ho:2, kw:kw + 2 * Wo:2, :])
    return jnp.concatenate(cols, axis=-1), Ho, Wo  # [B, Ho, Wo, 9*C]


def _lane_target_for_device():
    """256-lane output rows on v6e/v7x (fills the 256-wide MXU, wider unmasked
    stores); 128 on v5e / unknown chips (128-wide MXU -> extra block-diagonal
    zero work would approach the compute roofline there)."""
    try:
        kind = jax.devices()[0].device_kind.lower()
    except Exception:
        return 128
    if "v5" in kind:
        return 128
    if ("v6" in kind) or ("v7" in kind) or ("7x" in kind):
        return 256
    return 128


def conv3x3_s2_bn_relu(x_nhwc, w, b, gamma, beta, mean, var, eps,
                       out_dtype=jnp.float32,
                       compute_dtype=jnp.bfloat16,
                       row_target=8192):
    """Conv2d(k=3, s=2, p=1) + BatchNorm2d(eval) + ReLU as a tiled Pallas matmul.

    x_nhwc: [B, H, W, Cin]; w: [Cout, Cin, 3, 3] (PyTorch OIHW); b: [Cout].
    Returns [B, Ho, Wo, Cout] in `out_dtype`.
    """
    B, H, W, Cin = x_nhwc.shape
    Cout = w.shape[0]

    # im2col in the (bf16) compute dtype -> half the HBM footprint of f32.
    patches, Ho, Wo = _extract_patches_s2_k3_p1(x_nhwc.astype(compute_dtype))
    M, K, N = B * Ho * Wo, 9 * Cin, Cout

    # Fold eval-mode BatchNorm:  y = ((x*W + b) - mean) * gamma/sqrt(var+eps) + beta
    inv_std = 1.0 / jnp.sqrt(var.astype(jnp.float32) + eps)
    scale = gamma.astype(jnp.float32) * inv_std                              # [N]
    bias = (beta.astype(jnp.float32)
            + (b.astype(jnp.float32) - mean.astype(jnp.float32)) * scale)    # [N]
    # K index = (kh*3 + kw)*Cin + ci  <->  w[co, ci, kh, kw]
    w_mat = (jnp.transpose(w, (2, 3, 1, 0)).reshape(K, N).astype(jnp.float32)
             * scale[None, :])                                # BN scale folded in

    # Lane-dense output even when Cout does not divide 128 (24/48 in real
    # SwiftFormer): pad N up to the next power of two, then fold
    # R = lane_target / Npad output pixels into the lane dimension via a
    # block-diagonal weight so every stored row is a full 128/256-lane vector
    # (unmasked vst) with no in-kernel relayout.
    lane_target = _lane_target_for_device()
    if N <= lane_target:
        Npad = int(pl.next_power_of_2(N))
        R = lane_target // Npad
    else:
        Npad = _round_up(N, 128)
        R = 1
    if Npad > N:
        w_mat = jnp.pad(w_mat, ((0, 0), (0, Npad - N)))
        bias = jnp.pad(bias, (0, Npad - N))
    if R > 1:
        eye = jnp.eye(R, dtype=jnp.float32)
        w_big = jnp.einsum("rs,kn->rksn", eye, w_mat).reshape(R * K, R * Npad)
        bias_big = jnp.tile(bias, R).reshape(1, R * Npad)
    else:
        w_big = w_mat
        bias_big = bias.reshape(1, Npad)
    w_big = w_big.astype(compute_dtype)

    # --- M tiling -----------------------------------------------------------
    # Wide layout: MW rows of R*K (a free row-major view of the patch matrix).
    MW = pl.cdiv(M, R)
    MW_al = _round_up(MW, 16)                 # 16-row alignment (bf16 sublanes)
    bytes_in = R * K * 2                      # bf16 streamed row
    bytes_out = R * Npad * jnp.dtype(out_dtype).itemsize
    desired = min(row_target // R, (1 << 20) // bytes_in, (1 << 20) // bytes_out)
    desired = max(16, min(desired // 16 * 16, MW_al))
    # Largest tile (mult. of 16) that divides MW_al -> no tail padding of the
    # big patch matrix in the common case; prefer an even number of grid steps
    # so the "parallel" axis can split across v7x's two TensorCores.
    TW = None
    for cand in range(desired, 15, -16):
        if MW_al % cand == 0 and (MW_al // cand) % 2 == 0:
            TW = cand
            break
    if TW is None:
        for cand in range(desired, 15, -16):
            if MW_al % cand == 0:
                TW = cand
                break
    grid_m = MW_al // TW

    p2d = patches.reshape(M, K)
    if MW_al * R > M:
        # Tail rows are never read back (sliced off below); only hit when the
        # aligned row count exceeds M (rare for real shapes).
        p2d = jnp.pad(p2d, ((0, MW_al * R - M), (0, 0)))
    p_wide = p2d.reshape(MW_al, R * K)

    out_wide = pl.pallas_call(
        _matmul_bias_relu_kernel,
        out_shape=jax.ShapeDtypeStruct((MW_al, R * Npad), out_dtype),
        grid=(grid_m,),
        in_specs=[
            pl.BlockSpec((TW, R * K), lambda i: (i, 0)),        # streamed tile
            pl.BlockSpec((R * K, R * Npad), lambda i: (0, 0)),  # resident weights
            pl.BlockSpec((1, R * Npad), lambda i: (0, 0)),      # resident bias
        ],
        out_specs=pl.BlockSpec((TW, R * Npad), lambda i: (i, 0)),
        compiler_params=pltpu.CompilerParams(
            dimension_semantics=("parallel",)),   # shards over v7x's 2 TCs
    )(p_wide, w_big, bias_big)

    out2d = out_wide.reshape(MW_al * R, Npad)[:M, :N]
    return out2d.reshape(B, Ho, Wo, N)


def swiftformer_patch_embedding(x_nchw, params, eps=1e-5):
    """Forward pass of SwiftFormerPatchEmbedding.

    Input [B, in_chs, H, W] -> Output [B, out_chs, H/4, W/4] (NCHW, like PyTorch).
    """
    x = jnp.transpose(x_nchw, (0, 2, 3, 1))  # NCHW -> NHWC (glue, once)
    # Stage 1 emits bf16: stage 2 consumes bf16 anyway, so an f32 intermediate
    # would just double the inter-stage HBM traffic.
    x = conv3x3_s2_bn_relu(
        x, params["w1"], params["b1"],
        params["gamma1"], params["beta1"], params["mean1"], params["var1"], eps,
        out_dtype=jnp.bfloat16)
    x = conv3x3_s2_bn_relu(
        x, params["w2"], params["b2"],
        params["gamma2"], params["beta2"], params["mean2"], params["var2"], eps,
        out_dtype=jnp.float32)
    return jnp.transpose(x, (0, 3, 1, 2))  # NHWC -> NCHW


def _reference(x_nchw, params, eps=1e-5):
    """Pure-JAX reference (lax.conv, f32) for correctness checking."""
    def conv(x, w, b):
        y = jax.lax.conv_general_dilated(
            x, w, window_strides=(2, 2), padding=((1, 1), (1, 1)),
            dimension_numbers=("NCHW", "OIHW", "NCHW"))
        return y + b.reshape(1, -1, 1, 1)

    def bn(x, g, bt, m, v):
        g, bt, m, v = (t.reshape(1, -1, 1, 1) for t in (g, bt, m, v))
        return g * (x - m) / jnp.sqrt(v + eps) + bt

    x = jax.nn.relu(bn(conv(x_nchw, params["w1"], params["b1"]),
                       params["gamma1"], params["beta1"],
                       params["mean1"], params["var1"]))
    x = jax.nn.relu(bn(conv(x, params["w2"], params["b2"]),
                       params["gamma2"], params["beta2"],
                       params["mean2"], params["var2"]))
    return x


if __name__ == "__main__":
    # Small config: num_channels=4, embed_dims[0]=32 -> mid channels = 16.
    B, C_IN, H, W = 2, 4, 16, 16
    C_OUT = 32
    C_MID = C_OUT // 2
    EPS = 1e-5

    key = jax.random.PRNGKey(0)
    ks = jax.random.split(key, 13)
    x = jax.random.normal(ks[0], (B, C_IN, H, W), dtype=jnp.float32)

    params = {
        "w1": jax.random.normal(ks[1], (C_MID, C_IN, 3, 3), jnp.float32) * 0.1,
        "b1": jax.random.normal(ks[2], (C_MID,), jnp.float32) * 0.1,
        "gamma1": jax.random.uniform(ks[3], (C_MID,), jnp.float32, 0.5, 1.5),
        "beta1": jax.random.normal(ks[4], (C_MID,), jnp.float32) * 0.1,
        "mean1": jax.random.normal(ks[5], (C_MID,), jnp.float32) * 0.1,
        "var1": jax.random.uniform(ks[6], (C_MID,), jnp.float32, 0.5, 1.5),
        "w2": jax.random.normal(ks[7], (C_OUT, C_MID, 3, 3), jnp.float32) * 0.1,
        "b2": jax.random.normal(ks[8], (C_OUT,), jnp.float32) * 0.1,
        "gamma2": jax.random.uniform(ks[9], (C_OUT,), jnp.float32, 0.5, 1.5),
        "beta2": jax.random.normal(ks[10], (C_OUT,), jnp.float32) * 0.1,
        "mean2": jax.random.normal(ks[11], (C_OUT,), jnp.float32) * 0.1,
        "var2": jax.random.uniform(ks[12], (C_OUT,), jnp.float32, 0.5, 1.5),
    }

    fwd = jax.jit(swiftformer_patch_embedding)
    out = jax.block_until_ready(fwd(x, params, EPS))
    assert out.shape == (B, C_OUT, H // 4, W // 4), out.shape

    ref = jax.block_until_ready(_reference(x, params, EPS))
    # Tolerance is sized for bf16 matmul operands and the bf16 inter-stage
    # activation (f32 accumulation); structural bugs (wrong tap / channel
    # ordering) would produce O(1) errors.
    max_err = float(jnp.max(jnp.abs(out - ref)))
    assert jnp.allclose(out, ref, atol=1e-1, rtol=1e-1), max_err

    print("KERNEL_OK")
</pallas_src>

<mosaic_0001>
module attributes {stable_mosaic.version = 11 : i64} {
  func.func @_matmul_bias_relu_kernel(%arg0: i32, %arg1: memref<16x288xbf16, #tpu.memory_space<vmem>>, %arg2: memref<288x128xbf16, #tpu.memory_space<vmem>>, %arg3: memref<1x128xf32, #tpu.memory_space<vmem>>, %arg4: memref<16x128xbf16, #tpu.memory_space<vmem>>) attributes {dimension_semantics = [#tpu.dimension_semantics<parallel>], iteration_bounds = array<i64: 1>, scalar_prefetch = 0 : i64, scratch_operands = 0 : i64, tpu.core_type = #tpu.core_type<tc>, window_params = [{transform_indices = @transform_0, window_bounds = array<i64: 16, 288>}, {pipeline_mode = #tpu.pipeline_mode<synchronous>, transform_indices = @transform_1, window_bounds = array<i64: 288, 128>}, {pipeline_mode = #tpu.pipeline_mode<synchronous>, transform_indices = @transform_2, window_bounds = array<i64: 1, 128>}, {transform_indices = @transform_3, window_bounds = array<i64: 16, 128>}]} {
    %c0 = arith.constant 0 : index
    %c0_0 = arith.constant 0 : index
    %0 = vector.load %arg1[%c0, %c0_0] : memref<16x288xbf16, #tpu.memory_space<vmem>>, vector<16x288xbf16>
    %c0_1 = arith.constant 0 : index
    %c0_2 = arith.constant 0 : index
    %1 = vector.load %arg2[%c0_1, %c0_2] : memref<288x128xbf16, #tpu.memory_space<vmem>>, vector<288x128xbf16>
    %cst = arith.constant dense<0.000000e+00> : vector<16x128xf32>
    %2 = tpu.matmul %0, %1, %cst {dimension_numbers = #tpu.dot_dimension_numbers<[1], [0], [0], [1], [0, 0, 1, 1], [], []>} : vector<16x288xbf16>, vector<288x128xbf16>, vector<16x128xf32> -> vector<16x128xf32>
    %c0_3 = arith.constant 0 : index
    %c0_4 = arith.constant 0 : index
    %3 = vector.load %arg3[%c0_3, %c0_4] : memref<1x128xf32, #tpu.memory_space<vmem>>, vector<1x128xf32>
    %4 = vector.broadcast %3 : vector<1x128xf32> to vector<16x128xf32>
    %5 = arith.addf %2, %4 : vector<16x128xf32>
    %cst_5 = arith.constant 0.000000e+00 : f32
    %6 = vector.broadcast %cst_5 : f32 to vector<16x128xf32>
    %7 = arith.maximumf %5, %6 : vector<16x128xf32>
    %8 = arith.truncf %7 : vector<16x128xf32> to vector<16x128xbf16>
    %c0_6 = arith.constant 0 : index
    %c0_7 = arith.constant 0 : index
    %9 = vector.load %arg4[%c0_6, %c0_7] : memref<16x128xbf16, #tpu.memory_space<vmem>>, vector<16x128xbf16>
    tpu.vector_store %arg4[%c0_6, %c0_7], %8 {strides = array<i32>} : memref<16x128xbf16, #tpu.memory_space<vmem>>, vector<16x128xbf16>,
    return
  }
  func.func @transform_0(%arg0: i32) -> (i32, i32) {
    %c0_i32 = arith.constant 0 : i32
    %c0_i32_0 = arith.constant 0 : i32
    return %arg0, %c0_i32 : i32, i32
  }
  func.func @transform_1(%arg0: i32) -> (i32, i32) {
    %c0_i32 = arith.constant 0 : i32
    %c0_i32_0 = arith.constant 0 : i32
    %c0_i32_1 = arith.constant 0 : i32
    return %c0_i32, %c0_i32_0 : i32, i32
  }
  func.func @transform_2(%arg0: i32) -> (i32, i32) {
    %c0_i32 = arith.constant 0 : i32
    %c0_i32_0 = arith.constant 0 : i32
    %c0_i32_1 = arith.constant 0 : i32
    return %c0_i32, %c0_i32_0 : i32, i32
  }
  func.func @transform_3(%arg0: i32) -> (i32, i32) {
    %c0_i32 = arith.constant 0 : i32
    %c0_i32_0 = arith.constant 0 : i32
    return %arg0, %c0_i32 : i32, i32
  }
}

module attributes {stable_mosaic.version = 11 : i64} {
  func.func @_matmul_bias_relu_kernel(%arg0: i32, %arg1: memref<16x576xbf16, #tpu.memory_space<vmem>>, %arg2: memref<576x128xbf16, #tpu.memory_space<vmem>>, %arg3: memref<1x128xf32, #tpu.memory_space<vmem>>, %arg4: memref<16x128xf32, #tpu.memory_space<vmem>>) attributes {dimension_semantics = [#tpu.dimension_semantics<parallel>], iteration_bounds = array<i64: 1>, scalar_prefetch = 0 : i64, scratch_operands = 0 : i64, tpu.core_type = #tpu.core_type<tc>, window_params = [{transform_indices = @transform_0, window_bounds = array<i64: 16, 576>}, {pipeline_mode = #tpu.pipeline_mode<synchronous>, transform_indices = @transform_1, window_bounds = array<i64: 576, 128>}, {pipeline_mode = #tpu.pipeline_mode<synchronous>, transform_indices = @transform_2, window_bounds = array<i64: 1, 128>}, {transform_indices = @transform_3, window_bounds = array<i64: 16, 128>}]} {
    %c0 = arith.constant 0 : index
    %c0_0 = arith.constant 0 : index
    %0 = vector.load %arg1[%c0, %c0_0] : memref<16x576xbf16, #tpu.memory_space<vmem>>, vector<16x576xbf16>
    %c0_1 = arith.constant 0 : index
    %c0_2 = arith.constant 0 : index
    %1 = vector.load %arg2[%c0_1, %c0_2] : memref<576x128xbf16, #tpu.memory_space<vmem>>, vector<576x128xbf16>
    %cst = arith.constant dense<0.000000e+00> : vector<16x128xf32>
    %2 = tpu.matmul %0, %1, %cst {dimension_numbers = #tpu.dot_dimension_numbers<[1], [0], [0], [1], [0, 0, 1, 1], [], []>} : vector<16x576xbf16>, vector<576x128xbf16>, vector<16x128xf32> -> vector<16x128xf32>
    %c0_3 = arith.constant 0 : index
    %c0_4 = arith.constant 0 : index
    %3 = vector.load %arg3[%c0_3, %c0_4] : memref<1x128xf32, #tpu.memory_space<vmem>>, vector<1x128xf32>
    %4 = vector.broadcast %3 : vector<1x128xf32> to vector<16x128xf32>
    %5 = arith.addf %2, %4 : vector<16x128xf32>
    %cst_5 = arith.constant 0.000000e+00 : f32
    %6 = vector.broadcast %cst_5 : f32 to vector<16x128xf32>
    %7 = arith.maximumf %5, %6 : vector<16x128xf32>
    %c0_6 = arith.constant 0 : index
    %c0_7 = arith.constant 0 : index
    %8 = vector.load %arg4[%c0_6, %c0_7] : memref<16x128xf32, #tpu.memory_space<vmem>>, vector<16x128xf32>
    tpu.vector_store %arg4[%c0_6, %c0_7], %7 {strides = array<i32>} : memref<16x128xf32, #tpu.memory_space<vmem>>, vector<16x128xf32>,
    return
  }
  func.func @transform_0(%arg0: i32) -> (i32, i32) {
    %c0_i32 = arith.constant 0 : i32
    %c0_i32_0 = arith.constant 0 : i32
    return %arg0, %c0_i32 : i32, i32
  }
  func.func @transform_1(%arg0: i32) -> (i32, i32) {
    %c0_i32 = arith.constant 0 : i32
    %c0_i32_0 = arith.constant 0 : i32
    %c0_i32_1 = arith.constant 0 : i32
    return %c0_i32, %c0_i32_0 : i32, i32
  }
  func.func @transform_2(%arg0: i32) -> (i32, i32) {
    %c0_i32 = arith.constant 0 : i32
    %c0_i32_0 = arith.constant 0 : i32
    %c0_i32_1 = arith.constant 0 : i32
    return %c0_i32, %c0_i32_0 : i32, i32
  }
  func.func @transform_3(%arg0: i32) -> (i32, i32) {
    %c0_i32 = arith.constant 0 : i32
    %c0_i32_0 = arith.constant 0 : i32
    return %arg0, %c0_i32 : i32, i32
  }
}

</mosaic_0001>

<bundles_post_ra>
// kernel: tile.13
= control target key start
LH: loop header
LB: loop body
LE: loop exit
PB: predicated region body
PF: predicated region fallthrough
CT: control target
= control target key end

     0   :  { %s22_s0 = inlined_call_operand.vmem [shape: f32[16], index: 0, kind: input, shape index: {}]   ;;  %s23_s1 = inlined_call_operand.vmem [shape: f32[8,16], index: 1, kind: output, shape index: {}]  }
   0x1   :  { %v4_v0 = vld [vmem:[%s22_s0] ss:$0 sm:$0xff] }
   0x2   :  { %5 = vst [vmem:[%s23_s1] sm:$0xff] %v4_v0 }

// kernel: tile.14
= control target key start
LH: loop header
LB: loop body
LE: loop exit
PB: predicated region body
PF: predicated region fallthrough
CT: control target
= control target key end

     0   :  { %s67_s10 = smov 112   ;;  %s68_s11 = smov 80   ;;  %vm3_vm0 = vcmask 130048   ;;  %vm9_vm1 = vcmask 1048448   ;;  %vm15_vm2 = vcmask 917248   ;;  %vm21_vm3 = vcmask 786048   ;;  %s111_s0 = inlined_call_operand.vmem [shape: f32[8,16], index: 0, kind: input, shape index: {}]   ;;  %s112_s1 = inlined_call_operand.vmem [shape: f32[1,128], index: 1, kind: output, shape index: {}]  }
   0x1   :  { %v53_v0 = vld [vmem:[%s111_s0 + $0x7] sm:$0x1]   ;;  %v55_v1 = vld [vmem:[%s111_s0 + $0x5] sm:$0x1]   ;;  %v54_v2 = vld [vmem:[%s111_s0 + $0x6] sm:$0x1]  }
   0x2   :  { %7 = vrot.lane.b32.xlu0 %v53_v0, %s67_s10  ;;  %19 = vrot.lane.b32.xlu1 %v55_v1, %s68_s11  ;;  %v56_v3 = vld [vmem:[%s111_s0 + $0x4] sm:$0x1]   ;;  %v2_v4 = vld [vmem:[%s111_s0] sm:$0x1]   ;;  %s69_s18 = smov 96   ;;  %s70_s19 = smov 64  }
   0x3   :  { %4 = vst.msk [vmem:[#allocation0] sm:$0x1] %vm3_vm0, %v2_v4   ;;  %v57_v5 = vld [vmem:[%s111_s0 + $0x3] sm:$0x1]   ;;  %v58_v6 = vld [vmem:[%s111_s0 + $0x2] sm:$0x1]  }
   0x4   :  { %s71_s24 = smov 48   ;;  %s72_s25 = smov 32   ;;  %v59_v7 = vld [vmem:[%s111_s0 + $0x1] sm:$0x1]   ;;  %vm27_vm4 = vcmask 654848   ;;  %vm33_vm5 = vcmask 523648  }
   0x5   :  { %s73_s0 = smov 16   ;;  %vm39_vm6 = vcmask 392448   ;;  %vm45_vm7 = vcmask 261248  }
   0x6   :  { %13 = vrot.lane.b32.xlu0 %v54_v2, %s69_s18  ;;  %25 = vrot.lane.b32.xlu1 %v56_v3, %s70_s19 }
   0xa   :  { %31 = vrot.lane.b32.xlu0 %v57_v5, %s71_s24  ;;  %37 = vrot.lane.b32.xlu1 %v58_v6, %s72_s25 }
   0xe   :  { %43 = vrot.lane.b32.xlu0 %v59_v7, %s73_s0 }
  0x74   :  { %v8_v8 = vpop.permute.xlu0 %7   ;;  %v20_v9 = vpop.permute.xlu1 %19  }
  0x75   :  { %10 = vst.msk [vmem:[#allocation0] sm:$0x1] %vm9_vm1, %v8_v8  }
  0x78   :  { %v14_v10 = vpop.permute.xlu0 %13   ;;  %v26_v11 = vpop.permute.xlu1 %25  }
  0x79   :  { %16 = vst.msk [vmem:[#allocation0] sm:$0x1] %vm15_vm2, %v14_v10  }
  0x7a   :  { %22 = vst.msk [vmem:[#allocation0] sm:$0x1] %vm21_vm3, %v20_v9  }
  0x7b   :  { %28 = vst.msk [vmem:[#allocation0] sm:$0x1] %vm27_vm4, %v26_v11  }
  0x7c   :  { %v32_v12 = vpop.permute.xlu0 %31   ;;  %v38_v13 = vpop.permute.xlu1 %37  }
  0x7d   :  { %34 = vst.msk [vmem:[#allocation0] sm:$0x1] %vm33_vm5, %v32_v12  }
  0x7e   :  { %40 = vst.msk [vmem:[#allocation0] sm:$0x1] %vm39_vm6, %v38_v13  }
  0x80   :  { %v44_v14 = vpop.permute.xlu0 %43  }
  0x81   :  { %46 = vst.msk [vmem:[#allocation0] sm:$0x1] %vm45_vm7, %v44_v14  }
  0x88   :  { %v50_v15 = vld [vmem:[#allocation0] sm:$0x1] }
  0x89   :  { %52 = vst [vmem:[%s112_s1] sm:$0x1] %v50_v15 }

// kernel: tile.18
= control target key start
LH: loop header
LB: loop body
LE: loop exit
PB: predicated region body
PF: predicated region fallthrough
CT: control target
= control target key end

     0   :  { %s22_s0 = inlined_call_operand.vmem [shape: f32[32], index: 0, kind: input, shape index: {}]   ;;  %s23_s1 = inlined_call_operand.vmem [shape: f32[4,32], index: 1, kind: output, shape index: {}]  }
   0x1   :  { %v4_v0 = vld [vmem:[%s22_s0] ss:$0 sm:$0xff] }
   0x2   :  { %5 = vst [vmem:[%s23_s1] sm:$0xf] %v4_v0 }

// kernel: tile.19
= control target key start
LH: loop header
LB: loop body
LE: loop exit
PB: predicated region body
PF: predicated region fallthrough
CT: control target
= control target key end

     0   :  { %vm7_vm0 = vcmask 261120   ;;  %s37_s8 = smov 32   ;;  %s38_s9 = smov 64   ;;  %vm13_vm1 = vcmask 1048320   ;;  %vm19_vm2 = vcmask 785920   ;;  %vm25_vm3 = vcmask 523520   ;;  %s55_s0 = inlined_call_operand.vmem [shape: f32[4,32], index: 0, kind: input, shape index: {}]   ;;  %s56_s1 = inlined_call_operand.vmem [shape: f32[1,128], index: 1, kind: output, shape index: {}]  }
   0x1   :  { %v4_v0 = vld [vmem:[%s55_s0] sm:$0xf]  ;;  %s36_s0 = smov 96  }
   0x2   :  { %5 = vst [vmem:[#allocation1] sm:$0xf] %v4_v0 }
   0x9   :  { %v10_v1 = vld [vmem:[#allocation1 + $0x3] sm:$0x1]   ;;  %v22_v2 = vld [vmem:[#allocation1 + $0x1] sm:$0x1]   ;;  %v6_v3 = vld [vmem:[#allocation1] sm:$0x1]  }
   0xa   :  { %11 = vrot.lane.b32.xlu0 %v10_v1, %s36_s0  ;;  %23 = vrot.lane.b32.xlu1 %v22_v2, %s37_s8  ;;  %v16_v4 = vld [vmem:[#allocation1 + $0x2] sm:$0x1]   ;;  %8 = vst.msk [vmem:[#allocation0] sm:$0x1] %vm7_vm0, %v6_v3  }
   0xe   :  { %17 = vrot.lane.b32.xlu0 %v16_v4, %s38_s9 }
  0x7c   :  { %v12_v5 = vpop.permute.xlu0 %11   ;;  %v24_v6 = vpop.permute.xlu1 %23  }
  0x7d   :  { %14 = vst.msk [vmem:[#allocation0] sm:$0x1] %vm13_vm1, %v12_v5  }
  0x80   :  { %v18_v7 = vpop.permute.xlu0 %17  }
  0x81   :  { %20 = vst.msk [vmem:[#allocation0] sm:$0x1] %vm19_vm2, %v18_v7  }
  0x82   :  { %26 = vst.msk [vmem:[#allocation0] sm:$0x1] %vm25_vm3, %v24_v6  }
  0x89   :  { %v30_v8 = vld [vmem:[#allocation0] sm:$0x1] }
  0x8a   :  { %32 = vst [vmem:[%s56_s1] sm:$0x1] %v30_v8 }

// kernel: swiftformer_patch_embedding.2
= control target key start
LH: loop header
LB: loop body
LE: loop exit
PB: predicated region body
PF: predicated region fallthrough
CT: control target
= control target key end

     0   :  { %v376_v1 = vmov 0.0   ;;  %vm377_vm0 = vmmov 0   ;;  %vm185_vm1 = vcmask 261120   ;;  %s467_s1 = inlined_call_operand.vmem [shape: bf16[288,128], index: 1, kind: input, shape index: {}]   ;;  %s468_s0 = inlined_call_operand.vmem [shape: bf16[16,288], index: 0, kind: input, shape index: {}]   ;;  %s469_s2 = inlined_call_operand.vmem [shape: f32[1,128], index: 2, kind: input, shape index: {}]   ;;  %s470_s3 = inlined_call_operand.vmem [shape: bf16[16,128], index: 3, kind: output, shape index: {}]  }
   0x1   :  { %v354_v0 = vld [vmem:[%s467_s1 + $0x40] sm:$0xff]   ;;  %344 = vmatprep.subr.bf16.mxu1 %v376_v1  ;;  %348 = vmatprep.mubr.msk.bf16.mxu1 %vm377_vm0, %v376_v1  ;;  %v356_v3 = vld [vmem:[%s467_s1 + $0x48] sm:$0xff]   ;;  %v358_v5 = vld [vmem:[%s467_s1 + $0x50] sm:$0xff]  }
   0x2   :  { %v355_v2 = vld [vmem:[%s467_s1] sm:$0xff]   ;;  %319 = vmatprep.subr.bf16.mxu0 %v354_v0  ;;  %v357_v4 = vld [vmem:[%s467_s1 + $0x8] sm:$0xff]   ;;  %v359_v6 = vld [vmem:[%s467_s1 + $0x10] sm:$0xff]  }
   0x3   :  { %320 = vmatpush3.bf16.msra.mxu0 %v355_v2  ;;  %v360_v7 = vld [vmem:[%s467_s1 + $0x58] sm:$0xff]   ;;  %v362_v9 = vld [vmem:[%s467_s1 + $0x60] sm:$0xff]   ;;  %v364_v12 = vld [vmem:[%s467_s1 + $0x68] sm:$0xff]  }
   0x4   :  { %321 = vmatprep.subr.bf16.mxu0 %v356_v3  ;;  %v361_v8 = vld [vmem:[%s467_s1 + $0x18] sm:$0xff]   ;;  %v368_v10 = vld [vmem:[%s467_s1 + $0x80] sm:$0xff]   ;;  %v365_v13 = vld [vmem:[%s467_s1 + $0x28] sm:$0xff]  }
   0x5   :  { %v363_v11 = vld [vmem:[%s467_s1 + $0x20] sm:$0xff]   ;;  %345 = vmatpush3.bf16.msra.mxu1 %v368_v10  ;;  %v374_v15 = vld [vmem:[%s467_s1 + $0x88] sm:$0xff]   ;;  %v366_v16 = vld [vmem:[%s467_s1 + $0x70] sm:$0xff]  }
   0x6   :  { %346 = vmatprep.subr.bf16.mxu1 %v376_v1  ;;  %v373_v14 = vld [vmem:[%s468_s0 + $0x4] ss:$12 sps:$4 sm:$0xff]   ;;  %v375_v17 = vld [vmem:[%s468_s0 + $0x8] ss:$12 sps:$4 sm:$0xff]   ;;  %v369_v19 = vld [vmem:[%s467_s1 + $0x78] sm:$0xff]  }
   0x7   :  { %322 = vmatpush3.bf16.msra.mxu0 %v357_v4  ;;  %221 = vmatprep.mubr.bf16.mxu0 %v373_v14  ;;  %v367_v18 = vld [vmem:[%s467_s1 + $0x30] sm:$0xff]   ;;  %v370_v20 = vld [vmem:[%s467_s1 + $0x38] sm:$0xff]   ;;  %v371_v21 = vld [vmem:[%s468_s0] ss:$12 sps:$4 sm:$0xff]  }
   0x8   :  { %323 = vmatprep.subr.bf16.mxu0 %v358_v5  ;;  %v287_v28 = vld [vmem:[%s469_s2] ss:$0 sm:$0xff] }
   0x9   :  { %347 = vmatpush3.bf16.msra.mxu1 %v374_v15 }
   0xb   :  { %324 = vmatpush3.bf16.msra.mxu0 %v359_v6 }
   0xc   :  { %325 = vmatprep.subr.bf16.mxu0 %v360_v7  ;;  %349 = vmatmul.mubr.msk.bf16.vlgmr.msra.gmra.mrb[0].mxu1 %vm185_vm1, %v375_v17 }
   0xf   :  { %326 = vmatpush3.bf16.msra.mxu0 %v361_v8 }
  0x10   :  { %327 = vmatprep.subr.bf16.mxu0 %v362_v9 }
  0x13   :  { %328 = vmatpush3.bf16.msra.mxu0 %v363_v11 }
  0x14   :  { %329 = vmatprep.subr.bf16.mxu0 %v364_v12 }
  0x17   :  { %330 = vmatpush3.bf16.msra.mxu0 %v365_v13 }
  0x18   :  { %331 = vmatprep.subr.bf16.mxu0 %v366_v16 }
  0x1b   :  { %332 = vmatpush3.bf16.msra.mxu0 %v367_v18 }
  0x1c   :  { %333 = vmatprep.subr.bf16.mxu0 %v369_v19 }
  0x1f   :  { %334 = vmatpush3.bf16.msra.mxu0 %v370_v20 }
  0x22   :  { %222 = vmatmul.mubr.bf16.vlgmr.msra.gmra.mrb[0].mxu0 %v371_v21 }
  0xdf   :  { %v264_v22 = vpop.f32.mrb[0].mxu1 }
  0xe0   :  { %v350_v23 = vpop.f32.mrb[1].mxu1 }
  0xe1   :  { %v267_v24 = vpop.f32.mrb[2].mxu1 }
  0xe2   :  { %v351_v25 = vpop.f32.mrb[3].mxu1 }
  0xf5   :  { %v335_v26 = vpop.f32.mrb[0].mxu0 }
  0xf6   :  { %v336_v27 = vpop.f32.mrb[1].mxu0 }
  0xf7   :  { %v337_v29 = vadd.f32 %v336_v27, %v335_v26  ;;  %v338_v30 = vpop.f32.mrb[2].mxu0 }
  0xf8   :  { %v339_v31 = vpop.f32.mrb[3].mxu0 }
  0xf9   :  { %v224_v32 = vadd.f32 %v337_v29, %v287_v28  ;;  %v340_v33 = vadd.f32 %v339_v31, %v338_v30 }
  0xfb   :  { %v265_v34 = vadd.f32 %v264_v22, %v224_v32  ;;  %v227_v35 = vadd.f32 %v340_v33, %v287_v28 }
  0xfd   :  { %v268_v36 = vadd.f32 %v267_v24, %v227_v35  ;;  %v271_v37 = vmax.f32 %v265_v34, 0.0 }
  0xff   :  { %v272_v38 = vmax.f32 %v268_v36, 0.0 }
 0x101   :  { %v317_v39 = vpack.c.bf16 %v272_v38, %v271_v37 }
 0x103   :  { %318 = vst [vmem:[%s470_s3] sm:$0xff] %v317_v39  }

// kernel: swiftformer_patch_embedding.3
= control target key start
LH: loop header
LB: loop body
LE: loop exit
PB: predicated region body
PF: predicated region fallthrough
CT: control target
= control target key end

     0   :  { %v625_v33 = vmov 0.0   ;;  %vm626_vm0 = vmmov 0   ;;  %vm341_vm1 = vcmask 523264   ;;  %s779_s1 = inlined_call_operand.vmem [shape: bf16[576,128], index: 1, kind: input, shape index: {}]   ;;  %s780_s0 = inlined_call_operand.vmem [shape: bf16[16,576], index: 0, kind: input, shape index: {}]   ;;  %s781_s2 = inlined_call_operand.vmem [shape: f32[1,128], index: 2, kind: input, shape index: {}]   ;;  %s782_s3 = inlined_call_operand.vmem [shape: f32[16,128], index: 3, kind: output, shape index: {}]  }
   0x1   :  { %v582_v0 = vld [vmem:[%s779_s1 + $0x40] sm:$0xff]   ;;  %v586_v4 = vld [vmem:[%s779_s1 + $0x48] sm:$0xff]   ;;  %v590_v8 = vld [vmem:[%s779_s1 + $0x50] sm:$0xff]  }
   0x2   :  { %v583_v1 = vld [vmem:[%s779_s1] sm:$0xff]   ;;  %519 = vmatprep.subr.bf16.mxu0 %v582_v0  ;;  %v587_v5 = vld [vmem:[%s779_s1 + $0x8] sm:$0xff]   ;;  %v591_v9 = vld [vmem:[%s779_s1 + $0x10] sm:$0xff]  }
   0x3   :  { %v584_v2 = vld [vmem:[%s779_s1 + $0xc0] sm:$0xff]   ;;  %520 = vmatpush3.bf16.msra.mxu0 %v583_v1  ;;  %v588_v6 = vld [vmem:[%s779_s1 + $0xc8] sm:$0xff]   ;;  %v592_v10 = vld [vmem:[%s779_s1 + $0xd0] sm:$0xff]  }
   0x4   :  { %v585_v3 = vld [vmem:[%s779_s1 + $0x80] sm:$0xff]   ;;  %541 = vmatprep.subr.bf16.mxu1 %v584_v2  ;;  %521 = vmatprep.subr.bf16.mxu0 %v586_v4  ;;  %v589_v7 = vld [vmem:[%s779_s1 + $0x88] sm:$0xff]   ;;  %v593_v11 = vld [vmem:[%s779_s1 + $0x90] sm:$0xff]  }
   0x5   :  { %542 = vmatpush3.bf16.msra.mxu1 %v585_v3  ;;  %v594_v12 = vld [vmem:[%s779_s1 + $0x58] sm:$0xff]   ;;  %v598_v16 = vld [vmem:[%s779_s1 + $0x60] sm:$0xff]   ;;  %v602_v20 = vld [vmem:[%s779_s1 + $0x68] sm:$0xff]  }
   0x6   :  { %543 = vmatprep.subr.bf16.mxu1 %v588_v6  ;;  %v595_v13 = vld [vmem:[%s779_s1 + $0x18] sm:$0xff]   ;;  %v599_v17 = vld [vmem:[%s779_s1 + $0x20] sm:$0xff]   ;;  %v603_v21 = vld [vmem:[%s779_s1 + $0x28] sm:$0xff]  }
   0x7   :  { %522 = vmatpush3.bf16.msra.mxu0 %v587_v5  ;;  %v596_v14 = vld [vmem:[%s779_s1 + $0xd8] sm:$0xff]   ;;  %v600_v18 = vld [vmem:[%s779_s1 + $0xe0] sm:$0xff]   ;;  %v604_v22 = vld [vmem:[%s779_s1 + $0xe8] sm:$0xff]  }
   0x8   :  { %523 = vmatprep.subr.bf16.mxu0 %v590_v8  ;;  %v597_v15 = vld [vmem:[%s779_s1 + $0x98] sm:$0xff]   ;;  %v601_v19 = vld [vmem:[%s779_s1 + $0xa0] sm:$0xff]   ;;  %v605_v23 = vld [vmem:[%s779_s1 + $0xa8] sm:$0xff]  }
   0x9   :  { %544 = vmatpush3.bf16.msra.mxu1 %v589_v7  ;;  %v606_v24 = vld [vmem:[%s779_s1 + $0x70] sm:$0xff]   ;;  %v610_v28 = vld [vmem:[%s779_s1 + $0x78] sm:$0xff]   ;;  %v619_v36 = vld [vmem:[%s780_s0 + $0xc] ss:$20 sps:$4 sm:$0xff]  }
   0xa   :  { %545 = vmatprep.subr.bf16.mxu1 %v592_v10  ;;  %v607_v25 = vld [vmem:[%s779_s1 + $0x30] sm:$0xff]   ;;  %v611_v29 = vld [vmem:[%s779_s1 + $0x38] sm:$0xff]   ;;  %v620_v37 = vld [vmem:[%s779_s1 + $0x100] sm:$0xff]   ;;  %418 = vmatprep.mubr.bf16.mxu1 %v619_v36 }
   0xb   :  { %524 = vmatpush3.bf16.msra.mxu0 %v591_v9  ;;  %v608_v26 = vld [vmem:[%s779_s1 + $0xf0] sm:$0xff]   ;;  %v612_v30 = vld [vmem:[%s779_s1 + $0xf8] sm:$0xff]   ;;  %v621_v38 = vld [vmem:[%s779_s1 + $0x108] sm:$0xff]  }
   0xc   :  { %525 = vmatprep.subr.bf16.mxu0 %v594_v12  ;;  %v609_v27 = vld [vmem:[%s779_s1 + $0xb0] sm:$0xff]   ;;  %v615_v32 = vld [vmem:[%s780_s0 + $0x4] ss:$20 sps:$4 sm:$0xff]   ;;  %v617_v35 = vld [vmem:[%s780_s0 + $0x8] ss:$20 sps:$4 sm:$0xff]  }
   0xd   :  { %546 = vmatpush3.bf16.msra.mxu1 %v593_v11  ;;  %v613_v31 = vld [vmem:[%s780_s0] ss:$20 sps:$4 sm:$0xff]   ;;  %v616_v34 = vld [vmem:[%s779_s1 + $0xb8] sm:$0xff]   ;;  %377 = vmatprep.mubr.bf16.mxu0 %v615_v32  ;;  %v624_v41 = vld [vmem:[%s780_s0 + $0x10] ss:$20 sps:$4 sm:$0xff]  }
   0xe   :  { %547 = vmatprep.subr.bf16.mxu1 %v596_v14  ;;  %v622_v39 = vld [vmem:[%s779_s1 + $0x110] sm:$0xff]   ;;  %v623_v40 = vld [vmem:[%s779_s1 + $0x118] sm:$0xff]   ;;  %v476_v43 = vld [vmem:[%s781_s2] ss:$0 sm:$0xff] }
   0xf   :  { %526 = vmatpush3.bf16.msra.mxu0 %v595_v13 }
  0x10   :  { %527 = vmatprep.subr.bf16.mxu0 %v598_v16 }
  0x11   :  { %548 = vmatpush3.bf16.msra.mxu1 %v597_v15 }
  0x12   :  { %549 = vmatprep.subr.bf16.mxu1 %v600_v18 }
  0x13   :  { %528 = vmatpush3.bf16.msra.mxu0 %v599_v17 }
  0x14   :  { %529 = vmatprep.subr.bf16.mxu0 %v602_v20 }
  0x15   :  { %550 = vmatpush3.bf16.msra.mxu1 %v601_v19 }
  0x16   :  { %551 = vmatprep.subr.bf16.mxu1 %v604_v22 }
  0x17   :  { %530 = vmatpush3.bf16.msra.mxu0 %v603_v21 }
  0x18   :  { %531 = vmatprep.subr.bf16.mxu0 %v606_v24 }
  0x19   :  { %552 = vmatpush3.bf16.msra.mxu1 %v605_v23 }
  0x1a   :  { %553 = vmatprep.subr.bf16.mxu1 %v608_v26 }
  0x1b   :  { %532 = vmatpush3.bf16.msra.mxu0 %v607_v25 }
  0x1c   :  { %533 = vmatprep.subr.bf16.mxu0 %v610_v28 }
  0x1d   :  { %554 = vmatpush3.bf16.msra.mxu1 %v609_v27 }
  0x1e   :  { %555 = vmatprep.subr.bf16.mxu1 %v612_v30 }
  0x1f   :  { %534 = vmatpush3.bf16.msra.mxu0 %v611_v29 }
  0x20   :  { %568 = vmatprep.subr.bf16.mxu0 %v625_v33 }
  0x21   :  { %556 = vmatpush3.bf16.msra.mxu1 %v616_v34 }
  0x22   :  { %378 = vmatmul.mubr.bf16.vlgmr.msra.gmra.mrb[0].mxu0 %v613_v31 }
  0x23   :  { %576 = vmatprep.mubr.msk.bf16.mxu0 %vm626_vm0, %v625_v33  ;;  %569 = vmatpush3.bf16.msra.mxu0 %v620_v37 }
  0x24   :  { %419 = vmatmul.mubr.bf16.vlgmr.msra.gmra.mrb[0].mxu1 %v617_v35  ;;  %570 = vmatprep.subr.bf16.mxu0 %v625_v33 }
  0x27   :  { %571 = vmatpush3.bf16.msra.mxu0 %v621_v38 }
  0x28   :  { %572 = vmatprep.subr.bf16.mxu0 %v625_v33 }
  0x2b   :  { %573 = vmatpush3.bf16.msra.mxu0 %v622_v39 }
  0x2c   :  { %574 = vmatprep.subr.bf16.mxu0 %v625_v33 }
  0x2f   :  { %575 = vmatpush3.bf16.msra.mxu0 %v623_v40 }
  0x32   :  { %577 = vmatmul.mubr.msk.bf16.vlgmr.msra.gmra.mrb[4].mxu0 %vm341_vm1, %v624_v41 }
  0xf5   :  { %v535_v42 = vpop.f32.mrb[0].mxu0 }
  0xf6   :  { %v536_v44 = vpop.f32.mrb[1].mxu0 }
  0xf7   :  { %v537_v45 = vadd.f32 %v536_v44, %v535_v42  ;;  %v538_v46 = vpop.f32.mrb[2].mxu0  ;;  %v557_v47 = vpop.f32.mrb[0].mxu1 }
  0xf8   :  { %v539_v48 = vpop.f32.mrb[3].mxu0  ;;  %v558_v51 = vpop.f32.mrb[1].mxu1 }
  0xf9   :  { %v380_v49 = vadd.f32 %v537_v45, %v476_v43  ;;  %v540_v50 = vadd.f32 %v539_v48, %v538_v46  ;;  %v559_v52 = vadd.f32 %v558_v51, %v557_v47  ;;  %v560_v53 = vpop.f32.mrb[2].mxu1 }
  0xfa   :  { %v561_v55 = vpop.f32.mrb[3].mxu1 }
  0xfb   :  { %v383_v54 = vadd.f32 %v540_v50, %v476_v43  ;;  %v562_v56 = vadd.f32 %v561_v55, %v560_v53  ;;  %v421_v57 = vadd.f32 %v559_v52, %v380_v49 }
  0xfd   :  { %v424_v58 = vadd.f32 %v562_v56, %v383_v54 }
 0x105   :  { %v461_v59 = vpop.f32.mrb[4].mxu0 }
 0x106   :  { %v462_v60 = vadd.f32 %v461_v59, %v421_v57  ;;  %v578_v61 = vpop.f32.mrb[5].mxu0 }
 0x107   :  { %v464_v62 = vpop.f32.mrb[6].mxu0 }
 0x108   :  { %v468_v63 = vmax.f32 %v462_v60, 0.0  ;;  %v465_v0 = vadd.f32 %v464_v62, %v424_v58  ;;  %v579_v1 = vpop.f32.mrb[7].mxu0 }
 0x10a   :  { %470 = vst [vmem:[%s782_s3] sm:$0xff] %v468_v63  ;;  %v469_v2 = vmax.f32 %v465_v0, 0.0 }
 0x10c   :  { %471 = vst [vmem:[%s782_s3 + $0x8] sm:$0xff] %v469_v2 }

</bundles_post_ra>
